<compile_context>
chip_gen: v7x
topology: tpu7x:2x2x1
jax: 0.10.0
libtpu: 0.0.40
codegen_flags: <defaults>
</compile_context>

<pallas_src>
import jax
import jax.numpy as jnp
from jax.experimental import pallas as pl
from jax.experimental.pallas import tpu as pltpu


def _outconv_kernel(x_ref, w_ref, b_ref, o_ref):
    # x_ref: (C_in, T)   w_ref: (C_out, C_in)   b_ref: (C_out, 1)   o_ref: (C_out, T)
    acc = jnp.dot(w_ref[...], x_ref[...], preferred_element_type=jnp.float32)
    o_ref[...] = (acc + b_ref[...]).astype(o_ref.dtype)


def _pick_tile_hw(HW, C_in, C_out):
    """Pick the spatial tile: as big as possible under a conservative VMEM budget.

    Double-buffered x tile + y tile = 2*4*T*(C_in + C_out) bytes; keep that
    under ~12 MiB so it fits the v5e default scoped VMEM and well under v7x's
    64 MiB physical VMEM.
    """
    budget_bytes = 12 * 1024 * 1024
    cap = budget_bytes // (2 * 4 * (C_in + C_out))   # elements along HW
    cap = max(512, (cap // 128) * 128)               # lane-dense multiple of 128
    if HW <= cap:
        return HW        # full spatial extent -> always a legal block shape
    return cap           # multiple of 128; grid edge block handled by masking


@jax.jit
def outconv_forward(x_nchw, weight, bias):
    """1x1 Conv2d forward (torch nn.Conv2d(kernel_size=1) semantics).

    x_nchw : (N, C_in, H, W)  float32
    weight : (C_out, C_in, 1, 1)   (torch Conv2d layout)
    bias   : (C_out,)
    returns: (N, C_out, H, W)
    """
    N, C_in, H, W = x_nchw.shape
    C_out = weight.shape[0]
    HW = H * W

    x_flat = x_nchw.reshape(N, C_in, HW)        # free reshape (no data movement)
    w_mat = weight.reshape(C_out, C_in)         # (C_out, C_in)
    b_col = bias.reshape(C_out, 1)              # (C_out, 1)

    tile_hw = _pick_tile_hw(HW, C_in, C_out)
    grid = (N, pl.cdiv(HW, tile_hw))

    y_flat = pl.pallas_call(
        _outconv_kernel,
        out_shape=jax.ShapeDtypeStruct((N, C_out, HW), x_nchw.dtype),
        grid_spec=pltpu.PrefetchScalarGridSpec(
            num_scalar_prefetch=0,
            grid=grid,
            in_specs=[
                # x: one batch element, all input channels, one spatial tile.
                pl.BlockSpec((None, C_in, tile_hw), lambda n, s: (n, 0, s)),
                # weight / bias: resident in VMEM across the whole grid.
                pl.BlockSpec((C_out, C_in), lambda n, s: (0, 0)),
                pl.BlockSpec((C_out, 1), lambda n, s: (0, 0)),
            ],
            out_specs=pl.BlockSpec((None, C_out, tile_hw), lambda n, s: (n, 0, s)),
        ),
        compiler_params=pltpu.CompilerParams(
            # Both axes independent -> v7x megacore shards the grid across TCs.
            dimension_semantics=("parallel", "parallel"),
            vmem_limit_bytes=32 * 1024 * 1024,
        ),
    )(x_flat, w_mat, b_col)

    return y_flat.reshape(N, C_out, H, W)       # free reshape back to NCHW


def outconv_reference(x_nchw, weight, bias):
    """Pure-JAX reference (equivalent to torch F.conv2d with a 1x1 kernel)."""
    w = weight.reshape(weight.shape[0], weight.shape[1])  # (C_out, C_in)
    return jnp.einsum("nchw,oc->nohw", x_nchw, w) + bias[None, :, None, None]


if __name__ == "__main__":
    key = jax.random.PRNGKey(0)
    N, C_in, C_out, H, W = 2, 4, 2, 16, 16

    kx, kw, kb = jax.random.split(key, 3)
    x = jax.random.normal(kx, (N, C_in, H, W), dtype=jnp.float32)

    # Deterministic param init mimicking torch Conv2d default:
    # uniform(-k, k) with k = 1/sqrt(C_in * 1 * 1)
    k = 1.0 / (C_in ** 0.5)
    weight = jax.random.uniform(kw, (C_out, C_in, 1, 1), jnp.float32, -k, k)
    bias = jax.random.uniform(kb, (C_out,), jnp.float32, -k, k)

    y = outconv_forward(x, weight, bias)
    y = jax.block_until_ready(y)

    y_ref = outconv_reference(x, weight, bias)
    assert y.shape == (N, C_out, H, W)
    assert jnp.allclose(y, y_ref, atol=1e-5, rtol=1e-5), "mismatch vs reference"

    print("KERNEL_OK")
</pallas_src>

<mosaic_0001>
module attributes {stable_mosaic.version = 11 : i64} {
  func.func @_outconv_kernel(%arg0: i32, %arg1: i32, %arg2: memref<1x4x256xf32, #tpu.memory_space<vmem>>, %arg3: memref<2x4xf32, #tpu.memory_space<vmem>>, %arg4: memref<2x1xf32, #tpu.memory_space<vmem>>, %arg5: memref<1x2x256xf32, #tpu.memory_space<vmem>>) attributes {dimension_semantics = [#tpu.dimension_semantics<parallel>, #tpu.dimension_semantics<parallel>], iteration_bounds = array<i64: 2, 1>, scalar_prefetch = 0 : i64, scratch_operands = 0 : i64, tpu.core_type = #tpu.core_type<tc>, window_params = [{transform_indices = @transform_0, window_bounds = array<i64: 1, 4, 256>}, {pipeline_mode = #tpu.pipeline_mode<synchronous>, transform_indices = @transform_1, window_bounds = array<i64: 2, 4>}, {pipeline_mode = #tpu.pipeline_mode<synchronous>, transform_indices = @transform_2, window_bounds = array<i64: 2, 1>}, {transform_indices = @transform_3, window_bounds = array<i64: 1, 2, 256>}]} {
    %c0 = arith.constant 0 : index
    %c0_0 = arith.constant 0 : index
    %0 = vector.load %arg3[%c0, %c0_0] : memref<2x4xf32, #tpu.memory_space<vmem>>, vector<2x4xf32>
    %c0_1 = arith.constant 0 : index
    %c0_2 = arith.constant 0 : index
    %c0_3 = arith.constant 0 : index
    %1 = vector.load %arg2[%c0_1, %c0_2, %c0_3] : memref<1x4x256xf32, #tpu.memory_space<vmem>>, vector<1x4x256xf32>
    %2 = vector.shape_cast %1 : vector<1x4x256xf32> to vector<4x256xf32>
    %cst = arith.constant dense<0.000000e+00> : vector<2x256xf32>
    %3 = tpu.matmul %0, %2, %cst {dimension_numbers = #tpu.dot_dimension_numbers<[1], [0], [0], [1], [0, 0, 1, 1], [], []>} : vector<2x4xf32>, vector<4x256xf32>, vector<2x256xf32> -> vector<2x256xf32>
    %c0_4 = arith.constant 0 : index
    %c0_5 = arith.constant 0 : index
    %4 = vector.load %arg4[%c0_4, %c0_5] : memref<2x1xf32, #tpu.memory_space<vmem>>, vector<2x1xf32>
    %5 = vector.broadcast %4 : vector<2x1xf32> to vector<2x256xf32>
    %6 = arith.addf %3, %5 : vector<2x256xf32>
    %c0_6 = arith.constant 0 : index
    %c0_7 = arith.constant 0 : index
    %c0_8 = arith.constant 0 : index
    %7 = vector.load %arg5[%c0_6, %c0_7, %c0_8] : memref<1x2x256xf32, #tpu.memory_space<vmem>>, vector<1x2x256xf32>
    %8 = vector.shape_cast %7 : vector<1x2x256xf32> to vector<2x256xf32>
    %9 = vector.shape_cast %6 : vector<2x256xf32> to vector<1x2x256xf32>
    tpu.vector_store %arg5[%c0_6, %c0_7, %c0_8], %9 {strides = array<i32>} : memref<1x2x256xf32, #tpu.memory_space<vmem>>, vector<1x2x256xf32>,
    return
  }
  func.func @transform_0(%arg0: i32, %arg1: i32) -> (i32, i32, i32) {
    %c0_i32 = arith.constant 0 : i32
    %c0_i32_0 = arith.constant 0 : i32
    return %arg0, %c0_i32, %arg1 : i32, i32, i32
  }
  func.func @transform_1(%arg0: i32, %arg1: i32) -> (i32, i32) {
    %c0_i32 = arith.constant 0 : i32
    %c0_i32_0 = arith.constant 0 : i32
    %c0_i32_1 = arith.constant 0 : i32
    return %c0_i32, %c0_i32_0 : i32, i32
  }
  func.func @transform_2(%arg0: i32, %arg1: i32) -> (i32, i32) {
    %c0_i32 = arith.constant 0 : i32
    %c0_i32_0 = arith.constant 0 : i32
    %c0_i32_1 = arith.constant 0 : i32
    return %c0_i32, %c0_i32_0 : i32, i32
  }
  func.func @transform_3(%arg0: i32, %arg1: i32) -> (i32, i32, i32) {
    %c0_i32 = arith.constant 0 : i32
    %c0_i32_0 = arith.constant 0 : i32
    return %arg0, %c0_i32, %arg1 : i32, i32, i32
  }
}

</mosaic_0001>

<bundles_post_ra>
// kernel: outconv_forward.1
= control target key start
LH: loop header
LB: loop body
LE: loop exit
PB: predicated region body
PF: predicated region fallthrough
CT: control target
= control target key end

     0   :  { %s490_s12 = smov 0   ;;  %s492_s13 = smov 0   ;;  %s529_s0 = inlined_call_operand.vmem [shape: f32[2,4,256], index: 0, kind: input, shape index: {}]   ;;  %s530_s1 = inlined_call_operand.vmem [shape: f32[2,4], index: 1, kind: input, shape index: {}]   ;;  %s531_s2 = inlined_call_operand.vmem [shape: f32[2,1], index: 2, kind: input, shape index: {}]   ;;  %s532_s3 = inlined_call_operand.vmem [shape: f32[2,2,256], index: 3, kind: output, shape index: {}]  }
   0x1   :  { %s494_s14 = smov 0  }
   0x2 LB: > { %s25_s15 = sadd.s32 1, %s462_s13  ;;  %p403_p0 = scmp.ge.s32.totalorder %s466_s14, 1  ;;  %s466_s14 = sphi %s494_s14, %s13_s14   ;;  %s462_s13 = sphi %s492_s13, %s534_s13   ;;  %s458_s12 = sphi %s490_s12, %s533_s12  }
   0x3   : > { %p27_p1 = scmp.ge.s32.totalorder %s25_s15, 2  ;;  %p158_p2 = scmp.lt.s32.totalorder %s466_s14, 3 }
   0x5   : > { %s536_s15 = smov (%p27_p1, %s25_s15), 0  ;;  %p159_p3 = pnand %p403_p0, %p158_p2 }
   0x6   : > { %p191_p4 = scmp.lt.s32.totalorder (!%p159_p3), %s458_s12, 1  ;;  %v468_v0 = vmov (!%p159_p3), 0.0   ;;  %v212_v1 = vld [vmem:[%s531_s2] sm:$0x3] (!%p159_p3)  ;;  %v469_v2 = vmov (!%p159_p3), 0   ;;  %vm224_vm0 = vcmask (!%p159_p3), 1043456  }
   0x7   : > { %162 = sbr.rel (%p159_p3) target bundleno = 240 (0xf0), region = 32  ;;  %293 = vmatprep.mubr.f32.mxu0 (!%p159_p3), %v468_v0  ;;  %442 = vset.pattern.permute.xlu0 (!%p159_p3), %v469_v2  ;;  %v210_v5 = vld [vmem:[%s530_s1] sm:$0x3] (!%p159_p3)  ;;  %vm220_vm1 = vcmask (!%p159_p3), 31744  }
   0x8   : > { %215 = vperm.xlu0 (!%p159_p3), %442, %v212_v1  }
   0xe   : > { %s538_s12 = smov (!%p191_p4, %s458_s12), 1 }
   0xf   : > { %s414_s18 = sshll.u32 %s538_s12, 3  ;;  %s415_s24 = sshll.u32 %s538_s12, 2 }
  0x10   : > { %s198_s21 = scalar_lea.vmem %s529_s0, %s414_s18  ;;  %s208_s27 = scalar_lea.vmem %s532_s3, %s415_s24 }
  0x11   : > { %v211_v3 = vld [vmem:[%s198_s21] sm:$0xff] }
  0x12   : > { %v219_v4 = vcombine.high %v211_v3, %v211_v3 }
  0x14   : > { %408 = vmatprep.subr.msk.mxu0 %vm224_vm0, %v219_v4 }
  0x15   : > { %409 = vmatpush1.msk.msra.mxu0 %vm224_vm0, %v211_v3 }
  0x16   : > { %410 = vmatmul.mubr.msk.f32.vlgmr.msra.gmra.mrb[0].mxu0 %vm220_vm1, %v210_v5 }
  0x87   : > { %v216_v6 = vpop.permute.xlu0 %215 }
  0xe9   : > { %v295_v7 = vpop.f32.mrb[0].mxu0 }
  0xea   : > { %v296_v8 = vadd.f32 %v295_v7, %v216_v6  ;;  %v297_v9 = vpop.f32.mrb[1].mxu0 }
  0xeb   : > { %v298_v10 = vadd.f32 %v297_v9, %v216_v6 }
  0xed   : > { %v302_v11 = vcombine.low %v296_v8, %v298_v10 }
  0xef   : > { %411 = vst.sshfl [vmem:[%s208_s27] sm:$0x33 pattern:$0x76325410] %v302_v11 }
  0xf0 PF: > { %s13_s14 = sadd.s32 1, %s466_s14   ;;  %s533_s12 = smov %s462_s13 }
  0xf1   : > { %p10_p5 = scmp.ge.s32.totalorder %s13_s14, 4   ;;  %s534_s13 = smov %s536_s15 }
  0xf3   :  { %12 = sbr.rel (!%p10_p5) target bundleno = 2 (0x2), region = 62 }

</bundles_post_ra>
